<compile_context>
chip_gen: v7x
topology: tpu7x:2x2x1
jax: 0.10.0
libtpu: 0.0.40
codegen_flags: <defaults>
</compile_context>

<pallas_src>
import jax
import jax.numpy as jnp
from jax.experimental import pallas as pl
from jax.experimental.pallas import tpu as pltpu


def fused_conv_linear_kernel(wt_ref, p_ref, b_ref, o_ref):
    """Single fused matmul.

    wt_ref: (OUT, K)  fused (conv @ linear) weights, K = 9*Cin
    p_ref : (K, M)    im2col patches, M = N*H*W (lane-dense)
    b_ref : (OUT, 1)  fused bias
    o_ref : (OUT, M)  lane-dense output slab
    """
    y = jnp.dot(wt_ref[...], p_ref[...], preferred_element_type=jnp.float32)
    o_ref[...] = (y + b_ref[...]).astype(o_ref.dtype)


def _vmem_spec():
    # Gridless full-array placement in VMEM.
    return pl.BlockSpec(memory_space=pltpu.MemorySpace.VMEM)


@jax.jit
def model_forward(x_nhwc, conv_w, conv_b, lin_w, lin_b):
    """x_nhwc: (N, H, W, Cin). Returns (N, H, W, OUT)."""
    N, H, W, Cin = x_nhwc.shape
    OUT = lin_w.shape[1]
    K = 9 * Cin
    M = N * H * W

    # --- wrapper-side glue (all fused under jit) ---------------------------
    # Build the (K, M) patch slab channel/tap-major directly (no big transpose):
    #   tiny (Cin, N, H, W) transpose, pad H/W, 9 shifted views stacked on a
    #   leading tap axis, reshape -> K flatten order = (dy, dx, cin).
    x_cf = jnp.transpose(x_nhwc, (3, 0, 1, 2))                 # (Cin, N, H, W)
    x_pad = jnp.pad(x_cf, ((0, 0), (0, 0), (1, 1), (1, 1)))    # (Cin, N, H+2, W+2)
    taps = [x_pad[:, :, dy:dy + H, dx:dx + W]
            for dy in range(3) for dx in range(3)]             # 9 x (Cin, N, H, W)
    p = jnp.stack(taps, axis=0).reshape(K, M)                  # (K, M), M lane-dense

    # Algebraic fusion of Linear into conv weights (both are linear maps).
    w_eff = jnp.einsum("hwio,oq->hwiq", conv_w, lin_w)         # (3, 3, Cin, OUT)
    w_t = w_eff.reshape(K, OUT).T                              # (OUT, K) — matches p's K order
    b_eff = (conv_b @ lin_w + lin_b).reshape(OUT, 1)           # (OUT, 1)
    # -----------------------------------------------------------------------

    out_lane = pl.pallas_call(
        fused_conv_linear_kernel,
        out_shape=jax.ShapeDtypeStruct((OUT, M), x_nhwc.dtype),
        in_specs=[_vmem_spec(), _vmem_spec(), _vmem_spec()],
        out_specs=_vmem_spec(),
    )(w_t, p, b_eff)

    # Lane-dense slab (OUT, N*H*W) -> (N, H, W, OUT); fused by XLA under jit.
    return out_lane.T.reshape(N, H, W, OUT)


def reference_forward(x_nhwc, conv_w, conv_b, lin_w, lin_b):
    """Pure-JAX reference for validation."""
    v1 = jax.lax.conv_general_dilated(
        x_nhwc, conv_w,
        window_strides=(1, 1),
        padding=((1, 1), (1, 1)),
        dimension_numbers=("NHWC", "HWIO", "NHWC"),
    ) + conv_b
    v2 = jnp.einsum("nhwc,co->nhwo", v1, lin_w) + lin_b
    return v2


if __name__ == "__main__":
    # Small shapes consistent with the module: N=2, Cin=3, H=W=16, Cout=6, OUT=2
    N, Cin, H, W = 2, 3, 16, 16
    Cout, OUT = 6, 2

    key = jax.random.PRNGKey(0)
    k_x, k_cw, k_cb, k_lw, k_lb = jax.random.split(key, 5)

    # PyTorch-convention input (NCHW), transposed to kernel layout (NHWC).
    x1_nchw = jax.random.normal(k_x, (N, Cin, H, W), dtype=jnp.float32)
    x_nhwc = jnp.transpose(x1_nchw, (0, 2, 3, 1))

    # Deterministic parameter init (shapes from the module __init__).
    conv_w = jax.random.normal(k_cw, (3, 3, Cin, Cout), dtype=jnp.float32) * 0.1
    conv_b = jax.random.normal(k_cb, (Cout,), dtype=jnp.float32) * 0.1
    lin_w = jax.random.normal(k_lw, (Cout, OUT), dtype=jnp.float32) * 0.1
    lin_b = jax.random.normal(k_lb, (OUT,), dtype=jnp.float32) * 0.1

    out = model_forward(x_nhwc, conv_w, conv_b, lin_w, lin_b)
    out = jax.block_until_ready(out)

    ref = reference_forward(x_nhwc, conv_w, conv_b, lin_w, lin_b)
    assert out.shape == (N, H, W, OUT), out.shape
    assert jnp.allclose(out, ref, atol=1e-4, rtol=1e-4), "mismatch vs reference"

    print("KERNEL_OK")
</pallas_src>

<mosaic_0001>
module attributes {stable_mosaic.version = 11 : i64} {
  func.func @fused_conv_linear_kernel(%arg0: memref<2x27xf32, #tpu.memory_space<vmem>>, %arg1: memref<27x512xf32, #tpu.memory_space<vmem>>, %arg2: memref<2x1xf32, #tpu.memory_space<vmem>>, %arg3: memref<2x512xf32, #tpu.memory_space<vmem>>) attributes {dimension_semantics = [], scalar_prefetch = 0 : i64, scratch_operands = 0 : i64, tpu.core_type = #tpu.core_type<tc>} {
    %c0 = arith.constant 0 : index
    %c0_0 = arith.constant 0 : index
    %0 = vector.load %arg0[%c0, %c0_0] : memref<2x27xf32, #tpu.memory_space<vmem>>, vector<2x27xf32>
    %c0_1 = arith.constant 0 : index
    %c0_2 = arith.constant 0 : index
    %1 = vector.load %arg1[%c0_1, %c0_2] : memref<27x512xf32, #tpu.memory_space<vmem>>, vector<27x512xf32>
    %cst = arith.constant dense<0.000000e+00> : vector<2x512xf32>
    %2 = tpu.matmul %0, %1, %cst {dimension_numbers = #tpu.dot_dimension_numbers<[1], [0], [0], [1], [0, 0, 1, 1], [], []>} : vector<2x27xf32>, vector<27x512xf32>, vector<2x512xf32> -> vector<2x512xf32>
    %c0_3 = arith.constant 0 : index
    %c0_4 = arith.constant 0 : index
    %3 = vector.load %arg2[%c0_3, %c0_4] : memref<2x1xf32, #tpu.memory_space<vmem>>, vector<2x1xf32>
    %4 = vector.broadcast %3 : vector<2x1xf32> to vector<2x512xf32>
    %5 = arith.addf %2, %4 : vector<2x512xf32>
    %c0_5 = arith.constant 0 : index
    %c0_6 = arith.constant 0 : index
    %6 = vector.load %arg3[%c0_5, %c0_6] : memref<2x512xf32, #tpu.memory_space<vmem>>, vector<2x512xf32>
    tpu.vector_store %arg3[%c0_5, %c0_6], %5 {strides = array<i32>} : memref<2x512xf32, #tpu.memory_space<vmem>>, vector<2x512xf32>,
    return
  }
}

</mosaic_0001>

<bundles_post_ra>
// kernel: model_forward.1
= control target key start
LH: loop header
LB: loop body
LE: loop exit
PB: predicated region body
PF: predicated region fallthrough
CT: control target
= control target key end

     0   :  { %vm41_vm0 = vcmask 1042432   ;;  %v254_v3 = vmov 0.0   ;;  %v255_v8 = vmov 0   ;;  %vm256_vm1 = vmmov 1   ;;  %s348_s1 = inlined_call_operand.vmem [shape: f32[27,512], index: 1, kind: input, shape index: {}]   ;;  %s349_s2 = inlined_call_operand.vmem [shape: f32[2,1], index: 2, kind: input, shape index: {}]   ;;  %s350_s0 = inlined_call_operand.vmem [shape: f32[2,27], index: 0, kind: input, shape index: {}]   ;;  %s351_s3 = inlined_call_operand.vmem [shape: f32[2,512], index: 3, kind: output, shape index: {}]  }
   0x1   :  { %v16_v0 = vld [vmem:[%s348_s1 + $0x8] sm:$0xff]  ;;  %v18_v2 = vld [vmem:[%s348_s1 + $0x18] sm:$0xff]  ;;  %118 = vmatprep.mubr.f32.mxu0 %v254_v3  ;;  %189 = vmatprep.mubr.f32.mxu1 %v254_v3  ;;  %v15_v6 = vld [vmem:[%s348_s1] sm:$0xff]  ;;  %vm37_vm3 = vcmask 220160   ;;  %v257_v29 = vmov 1983009808   ;;  %v205_v31 = vlaneseq }
   0x2   :  { %v20_v1 = vld [vmem:[%s348_s1 + $0x28] sm:$0xff]  ;;  %v22_v5 = vld [vmem:[%s348_s1 + $0x38] sm:$0xff]  ;;  %v19_v7 = vld [vmem:[%s348_s1 + $0x20] sm:$0xff]  ;;  %253 = vset.pattern.permute.xlu0 %v255_v8  ;;  %v203_v30 = vunpack.c.l.s4 %v257_v29 }
   0x3   :  { %v229_v4 = vpack.c.bf16 %v20_v1, %v16_v0  ;;  %v239_v9 = vpack.c.bf16 %v22_v5, %v18_v2  ;;  %v231_v10 = vpack.c.bf16 %v19_v7, %v15_v6  ;;  %v17_v11 = vld [vmem:[%s348_s1 + $0x10] sm:$0xff]  ;;  %v24_v13 = vld [vmem:[%s348_s1 + $0x48] sm:$0xff]  ;;  %vm309_vm2 = vmpackc.low %vm41_vm0, %vm256_vm1  ;;  %v206_v34 = vshrl.u32 %v205_v31, 7 }
   0x4   :  { %v21_v12 = vld [vmem:[%s348_s1 + $0x30] sm:$0xff]  ;;  %v28_v15 = vld [vmem:[%s348_s1 + $0x68] sm:$0x7]  ;;  %v26_v17 = vld [vmem:[%s348_s1 + $0x58] sm:$0xff]  ;;  %v204_v33 = vunpack.c.0.s8 %v203_v30 }
   0x5   :  { %230 = vmatprep.subr.bf16.mxu0 %v229_v4  ;;  %v241_v14 = vpack.c.bf16 %v21_v12, %v17_v11  ;;  %240 = vmatprep.subr.bf16.mxu1 %v239_v9  ;;  %v233_v18 = vpack.c.bf16 %v28_v15, %v24_v13  ;;  %v30_v19 = vld [vmem:[%s348_s1 + $0x78] sm:$0x7]  ;;  %v23_v20 = vld [vmem:[%s348_s1 + $0x40] sm:$0xff]  ;;  %v25_v24 = vld [vmem:[%s348_s1 + $0x50] sm:$0xff] }
   0x6   :  { %232 = vmatpush1.bf16.msra.mxu0 %v231_v10  ;;  %v27_v21 = vld [vmem:[%s348_s1 + $0x60] sm:$0x7]  ;;  %v243_v22 = vpack.c.bf16 %v30_v19, %v26_v17  ;;  %v29_v25 = vld [vmem:[%s348_s1 + $0x70] sm:$0x7]  ;;  %v207_v41 = vsub.s32 %v204_v33, %v206_v34 }
   0x7   :  { %242 = vmatpush1.bf16.msra.mxu1 %v241_v14  ;;  %v236_v23 = vpack.c.bf16 %v27_v21, %v23_v20  ;;  %235 = vmatprep.subr.msk.bf16.mxu0 %vm309_vm2, %v233_v18  ;;  %v246_v26 = vpack.c.bf16 %v29_v25, %v25_v24  ;;  %v31_v27 = vld [vmem:[%s349_s2] sm:$0x3] }
   0x8   :  { %245 = vmatprep.subr.msk.bf16.mxu1 %vm309_vm2, %v243_v22  ;;  %34 = vperm.xlu0 %253, %v31_v27   ;;  %v14_v28 = vld [vmem:[%s350_s0] sm:$0x3] }
   0xa   :  { %238 = vmatpush1.bf16.msk.msra.mxu0 %vm309_vm2, %v236_v23 }
   0xb   :  { %248 = vmatpush1.bf16.msk.msra.mxu1 %vm309_vm2, %v246_v26 }
   0xd   :  { %225 = vmatmul.mubr.msk.f32.vlgmr.msra.gmra.mrb[0].mxu0 %vm37_vm3, %v14_v28 }
   0xe   :  { %228 = vmatmul.mubr.msk.f32.vlgmr.msra.gmra.mrb[0].mxu1 %vm37_vm3, %v14_v28 }
  0x87   :  { %v35_v32 = vpop.permute.xlu0 %34 }
  0xe0   :  { %v120_v35 = vpop.f32.mrb[0].mxu0 }
  0xe1   :  { %v121_v36 = vadd.f32 %v120_v35, %v35_v32  ;;  %v191_v37 = vpop.f32.mrb[0].mxu1  ;;  %v122_v38 = vpop.f32.mrb[1].mxu0 }
  0xe2   :  { %v192_v39 = vadd.f32 %v191_v37, %v35_v32  ;;  %v123_v40 = vadd.f32 %v122_v38, %v35_v32  ;;  %v193_v42 = vpop.f32.mrb[1].mxu1 }
  0xe3   :  { %v194_v43 = vadd.f32 %v193_v42, %v35_v32 }
  0xe4   :  { %v200_v44 = vcombine.low %v121_v36, %v123_v40 }
  0xe5   :  { %v201_v45 = vcombine.low %v192_v39, %v194_v43 }
  0xe6   :  { %v208_v46 = vrot.slane %v200_v44, %v207_v41 }
  0xe7   :  { %v215_v47 = vrot.slane %v201_v45, %v207_v41 }
  0xe9   :  { %v216_v48 = vcombine.low %v208_v46, %v215_v47 }
  0xeb   :  { %218 = vst [vmem:[%s351_s3] sm:$0xff] %v216_v48 }

</bundles_post_ra>
